<compile_context>
chip_gen: v6e
topology: v6e:2x2x1
jax: 0.10.0
libtpu: 0.0.40
codegen_flags: <defaults>
</compile_context>

<pallas_src>
import jax
import jax.numpy as jnp
from jax import lax
from jax.experimental import pallas as pl
from jax.experimental.pallas import tpu as pltpu

_LANE = 128
_SUBLANE_BY_ITEMSIZE = {4: 8, 2: 16, 1: 32}   # f32 / bf16 / int8-fp8 sublane packing


def _round_up(x, m):
    return ((x + m - 1) // m) * m


def _fit_tile(desired, padded_dim, base):
    """Largest multiple of `base` that is <= desired and divides padded_dim."""
    t = min(max(desired, base), padded_dim)
    t = (t // base) * base
    while padded_dim % t != 0:
        t -= base
    return t


def _vmem_bytes(tm, tn, tk, in_bytes, w_bytes, out_bytes, use_scratch):
    b = 2 * tm * tk * in_bytes        # double-buffered x tiles
    b += 2 * tn * tk * w_bytes        # double-buffered weight tiles
    b += 2 * tm * tn * out_bytes      # double-buffered output tiles
    b += 2 * 1 * tn * 4               # bias tiles (f32)
    if use_scratch:
        b += tm * tn * 4              # f32 accumulator scratch
    return b


def _linear_kernel_out_acc(x_ref, w_ref, b_ref, o_ref):
    """f32 output: accumulate directly into the resident output tile."""
    k = pl.program_id(2)

    @pl.when(k == 0)
    def _():
        # Bias folded into the accumulator init -> no epilogue needed at all.
        o_ref[...] = jnp.broadcast_to(b_ref[...], o_ref.shape).astype(o_ref.dtype)

    # (tm,tk) x (tn,tk) contracting on K of both operands (NT form, native
    # PyTorch weight layout). Lowers to the MXU without an XLU transpose.
    o_ref[...] += lax.dot_general(
        x_ref[...],
        w_ref[...],
        dimension_numbers=(((1,), (1,)), ((), ())),
        preferred_element_type=jnp.float32,
    )


def _linear_kernel_scratch_acc(x_ref, w_ref, b_ref, o_ref, acc_ref):
    """Narrow output dtype: f32 scratch accumulator, cast+store on last K step."""
    k = pl.program_id(2)

    @pl.when(k == 0)
    def _():
        acc_ref[...] = jnp.broadcast_to(b_ref[...], acc_ref.shape).astype(jnp.float32)

    acc_ref[...] += lax.dot_general(
        x_ref[...],
        w_ref[...],
        dimension_numbers=(((1,), (1,)), ((), ())),
        preferred_element_type=jnp.float32,
    )

    @pl.when(k == pl.num_programs(2) - 1)
    def _():
        o_ref[...] = acc_ref[...].astype(o_ref.dtype)


def custom_linear(x, weight, bias, *, tm=512, tn=512, tk=1024, compute_dtype=None):
    """y = x @ weight.T + bias, matching CustomLinear.forward.

    x: (M, K), weight: (N, K) [PyTorch layout], bias: (N,). Returns (M, N)
    in x.dtype. `compute_dtype` (e.g. jnp.bfloat16) optionally casts x/weight
    tiles for MXU throughput while keeping f32 accumulation.
    """
    M, K = x.shape
    N, K2 = weight.shape
    assert K == K2, "in_features mismatch"
    assert bias.shape == (N,), "bias shape mismatch"

    out_dtype = x.dtype
    if compute_dtype is not None:
        x = x.astype(compute_dtype)
        weight = weight.astype(compute_dtype)

    in_bytes = jnp.dtype(x.dtype).itemsize
    w_bytes = jnp.dtype(weight.dtype).itemsize
    out_bytes = jnp.dtype(out_dtype).itemsize
    base_m = _SUBLANE_BY_ITEMSIZE.get(in_bytes, 8)

    # Pad only to the hardware base (sublane / lane), never to tile size.
    Mp = _round_up(M, base_m)
    Kp = _round_up(K, _LANE)
    Np = _round_up(N, _LANE)

    # Tiles: largest base-aligned divisors of the padded dims <= requested.
    tm = _fit_tile(tm, Mp, base_m)
    tn = _fit_tile(tn, Np, _LANE)
    tk = _fit_tile(tk, Kp, _LANE)

    # Budget the double-buffered footprint against this generation's VMEM
    # (64 MiB per TensorCore on v7x, 128 MiB on v5e/v6e).
    try:
        vmem_cap = int(pltpu.get_tpu_info().vmem_capacity_bytes)
    except Exception:
        vmem_cap = 64 * 1024 * 1024   # conservative fallback (v7x per-TC)
    budget = int(vmem_cap * 0.7)

    use_scratch = jnp.dtype(out_dtype) != jnp.float32

    def need():
        return _vmem_bytes(tm, tn, tk, in_bytes, w_bytes, out_bytes, use_scratch)

    while need() > budget and tk > _LANE:
        tk = _fit_tile(tk // 2, Kp, _LANE)
    while need() > budget and tn > _LANE:
        tn = _fit_tile(tn // 2, Np, _LANE)
    while need() > budget and tm > base_m:
        tm = _fit_tile(tm // 2, Mp, base_m)

    vmem_limit = min(max(int(need() * 1.3), 32 << 20), vmem_cap)

    # Zero-pad to the base-aligned shapes (zeros contribute nothing).
    x_p = x if (Mp == M and Kp == K) else jnp.pad(x, ((0, Mp - M), (0, Kp - K)))
    w_p = weight if (Np == N and Kp == K) else jnp.pad(
        weight, ((0, Np - N), (0, Kp - K)))
    b_p = bias.astype(jnp.float32)
    if Np != N:
        b_p = jnp.pad(b_p, (0, Np - N))
    b_p = b_p.reshape(1, Np)

    grid = (Mp // tm, Np // tn, Kp // tk)

    if use_scratch:
        kernel = _linear_kernel_scratch_acc
        scratch_shapes = [pltpu.VMEM((tm, tn), jnp.float32)]
    else:
        kernel = _linear_kernel_out_acc
        scratch_shapes = []

    cost = pl.CostEstimate(
        flops=2 * Mp * Np * Kp,
        bytes_accessed=(
            (Np // tn) * Mp * Kp * in_bytes      # x re-streamed once per N tile
            + (Mp // tm) * Np * Kp * w_bytes     # W re-streamed once per M tile
            + Mp * Np * out_bytes                # output written once
            + Np * 4                             # bias
        ),
        transcendentals=0,
    )

    y_p = pl.pallas_call(
        kernel,
        out_shape=jax.ShapeDtypeStruct((Mp, Np), out_dtype),
        grid_spec=pltpu.PrefetchScalarGridSpec(
            num_scalar_prefetch=0,
            grid=grid,
            in_specs=[
                pl.BlockSpec((tm, tk), lambda i, j, k: (i, k)),   # x tile
                pl.BlockSpec((tn, tk), lambda i, j, k: (j, k)),   # weight (N,K) tile
                pl.BlockSpec((1, tn), lambda i, j, k: (0, j)),    # bias tile
            ],
            out_specs=pl.BlockSpec((tm, tn), lambda i, j, k: (i, j)),
            scratch_shapes=scratch_shapes,
        ),
        compiler_params=pltpu.CompilerParams(
            # i/j "parallel" -> megacore-shardable on v7x (needs >=2 blocks on
            # at least one of them to use both TensorCores); k is the carried
            # reduction axis and must stay last / "arbitrary".
            dimension_semantics=("parallel", "parallel", "arbitrary"),
            vmem_limit_bytes=vmem_limit,
        ),
        cost_estimate=cost,
    )(x_p, w_p, b_p)

    if Mp == M and Np == N:
        return y_p
    return y_p[:M, :N]


if __name__ == "__main__":
    key = jax.random.PRNGKey(0)
    kx, kw, kb = jax.random.split(key, 3)

    # Test 1: small shapes consistent with the module: batch=8, in=32, out=16.
    batch, in_features, out_features = 8, 32, 16
    x = jax.random.normal(kx, (batch, in_features), dtype=jnp.float32)
    weight = jax.random.normal(kw, (out_features, in_features), dtype=jnp.float32)
    bias = jax.random.normal(kb, (out_features,), dtype=jnp.float32)

    y = custom_linear(x, weight, bias)
    jax.block_until_ready(y)
    y_ref = x @ weight.T + bias
    assert y.shape == (batch, out_features)
    assert jnp.allclose(y, y_ref, atol=1e-4, rtol=1e-4)

    # Test 2: multi-tile grid (exercises K accumulation, pl.when init, and the
    # direct-into-output f32 accumulation path) with small explicit tiles.
    k2x, k2w, k2b = jax.random.split(jax.random.PRNGKey(1), 3)
    M2, K2, N2 = 16, 256, 256
    x2 = jax.random.normal(k2x, (M2, K2), dtype=jnp.float32)
    w2 = jax.random.normal(k2w, (N2, K2), dtype=jnp.float32)
    b2 = jax.random.normal(k2b, (N2,), dtype=jnp.float32)
    y2 = custom_linear(x2, w2, b2, tm=8, tn=128, tk=128)
    jax.block_until_ready(y2)
    y2_ref = x2 @ w2.T + b2
    assert jnp.allclose(y2, y2_ref, atol=1e-3, rtol=1e-4)

    # Test 3: bf16 inputs/output (exercises the f32-scratch accumulator path
    # and base-only padding of a non-tile-multiple K).
    k3x, k3w, k3b = jax.random.split(jax.random.PRNGKey(2), 3)
    M3, K3, N3 = 32, 384, 256
    x3 = jax.random.normal(k3x, (M3, K3), dtype=jnp.float32).astype(jnp.bfloat16)
    w3 = jax.random.normal(k3w, (N3, K3), dtype=jnp.float32).astype(jnp.bfloat16)
    b3 = jax.random.normal(k3b, (N3,), dtype=jnp.float32)
    y3 = custom_linear(x3, w3, b3)
    jax.block_until_ready(y3)
    y3_ref = x3.astype(jnp.float32) @ w3.astype(jnp.float32).T + b3
    assert jnp.allclose(y3.astype(jnp.float32), y3_ref, atol=5e-1, rtol=5e-2)

    print("KERNEL_OK")
</pallas_src>

<mosaic_0001>
module attributes {stable_mosaic.version = 11 : i64} {
  func.func @_linear_kernel_out_acc(%arg0: i32, %arg1: i32, %arg2: i32, %arg3: memref<8x128xf32, #tpu.memory_space<vmem>>, %arg4: memref<128x128xf32, #tpu.memory_space<vmem>>, %arg5: memref<1x128xf32, #tpu.memory_space<vmem>>, %arg6: memref<8x128xf32, #tpu.memory_space<vmem>>) attributes {dimension_semantics = [#tpu.dimension_semantics<parallel>, #tpu.dimension_semantics<parallel>, #tpu.dimension_semantics<arbitrary>], iteration_bounds = array<i64: 1, 1, 1>, scalar_prefetch = 0 : i64, scratch_operands = 0 : i64, tpu.core_type = #tpu.core_type<tc>, window_params = [{transform_indices = @transform_0, window_bounds = array<i64: 8, 128>}, {transform_indices = @transform_1, window_bounds = array<i64: 128, 128>}, {transform_indices = @transform_2, window_bounds = array<i64: 1, 128>}, {transform_indices = @transform_3, window_bounds = array<i64: 8, 128>}]} {
    %c0_i32 = arith.constant 0 : i32
    %0 = arith.cmpi eq, %arg2, %c0_i32 : i32
    %1 = arith.extui %0 : i1 to i32
    %c0_i32_0 = arith.constant 0 : i32
    %2 = arith.cmpi ne, %1, %c0_i32_0 : i32
    scf.if %2 {
      %c0_8 = arith.constant 0 : index
      %c0_9 = arith.constant 0 : index
      %9 = vector.load %arg5[%c0_8, %c0_9] : memref<1x128xf32, #tpu.memory_space<vmem>>, vector<1x128xf32>
      %10 = vector.shape_cast %9 : vector<1x128xf32> to vector<1x128xf32>
      %11 = vector.broadcast %10 : vector<1x128xf32> to vector<8x128xf32>
      %c0_10 = arith.constant 0 : index
      %c0_11 = arith.constant 0 : index
      %12 = vector.load %arg6[%c0_10, %c0_11] : memref<8x128xf32, #tpu.memory_space<vmem>>, vector<8x128xf32>
      tpu.vector_store %arg6[%c0_10, %c0_11], %11 {strides = array<i32>} : memref<8x128xf32, #tpu.memory_space<vmem>>, vector<8x128xf32>,
    } else {
    }
    %c0 = arith.constant 0 : index
    %c0_1 = arith.constant 0 : index
    %3 = vector.load %arg6[%c0, %c0_1] : memref<8x128xf32, #tpu.memory_space<vmem>>, vector<8x128xf32>
    %c0_2 = arith.constant 0 : index
    %c0_3 = arith.constant 0 : index
    %4 = vector.load %arg3[%c0_2, %c0_3] : memref<8x128xf32, #tpu.memory_space<vmem>>, vector<8x128xf32>
    %c0_4 = arith.constant 0 : index
    %c0_5 = arith.constant 0 : index
    %5 = vector.load %arg4[%c0_4, %c0_5] : memref<128x128xf32, #tpu.memory_space<vmem>>, vector<128x128xf32>
    %cst = arith.constant dense<0.000000e+00> : vector<8x128xf32>
    %6 = tpu.matmul %4, %5, %cst {dimension_numbers = #tpu.dot_dimension_numbers<[1], [1], [0], [0], [0, 0, 1, 0], [], []>} : vector<8x128xf32>, vector<128x128xf32>, vector<8x128xf32> -> vector<8x128xf32>
    %7 = arith.addf %3, %6 : vector<8x128xf32>
    %c0_6 = arith.constant 0 : index
    %c0_7 = arith.constant 0 : index
    %8 = vector.load %arg6[%c0_6, %c0_7] : memref<8x128xf32, #tpu.memory_space<vmem>>, vector<8x128xf32>
    tpu.vector_store %arg6[%c0_6, %c0_7], %7 {strides = array<i32>} : memref<8x128xf32, #tpu.memory_space<vmem>>, vector<8x128xf32>,
    return
  }
  func.func @transform_0(%arg0: i32, %arg1: i32, %arg2: i32) -> (i32, i32) {
    %c0_i32 = arith.constant 0 : i32
    return %arg0, %arg2 : i32, i32
  }
  func.func @transform_1(%arg0: i32, %arg1: i32, %arg2: i32) -> (i32, i32) {
    %c0_i32 = arith.constant 0 : i32
    return %arg1, %arg2 : i32, i32
  }
  func.func @transform_2(%arg0: i32, %arg1: i32, %arg2: i32) -> (i32, i32) {
    %c0_i32 = arith.constant 0 : i32
    %c0_i32_0 = arith.constant 0 : i32
    return %c0_i32, %arg1 : i32, i32
  }
  func.func @transform_3(%arg0: i32, %arg1: i32, %arg2: i32) -> (i32, i32) {
    %c0_i32 = arith.constant 0 : i32
    return %arg0, %arg1 : i32, i32
  }
}

</mosaic_0001>

<bundles_post_ra>
// kernel: tpu_custom_call.1
= control target key start
LH: loop header
LB: loop body
LE: loop exit
PB: predicated region body
PF: predicated region fallthrough
CT: control target
= control target key end

     0   :  { %8 = vsyncpa [#allocation3], 0  ;;  %s324_s0 = inlined_call_operand.hbm [shape: f32[8,128], index: 0, kind: input, shape index: {}]   ;;  %s325_s1 = inlined_call_operand.hbm [shape: f32[128,128], index: 1, kind: input, shape index: {}]   ;;  %s326_s2 = inlined_call_operand.vmem [shape: f32[1,128], index: 2, kind: input, shape index: {}]   ;;  %s327_s3 = inlined_call_operand.hbm [shape: f32[8,128], index: 3, kind: output, shape index: {}]  }
   0x1   :  { %9 = vsyncpa [#allocation6], 0 }
   0x2   :  { %10 = vsyncpa [#allocation4], 0  ;;  %s285_s12 = smov [#allocation2]   ;;  %s286_s14 = smov [#allocation5]  }
   0x3   :  { %s17_s13 = sshll.u32 %s285_s12, 4  ;;  %s26_s15 = sshll.u32 %s286_s14, 4  ;;  %s18_s13 = int_to_ptr.vmem [resolvable:$true] %s17_s13  ;;  %s27_s15 = int_to_ptr.vmem [resolvable:$true] %s26_s15 }
   0x4   :  { %s227_s16 = scalar_lea.vmem %s18_s13, 128  ;;  %p232_p1 = scmp.lt.s32.totalorder %s18_s13, %s18_s13 }
   0x5   :  { %p228_p0 = scmp.ne.s32.totalorder %s18_s13, %s227_s16  ;;  %p233_p2 = scmp.lt.s32.totalorder %s227_s16, %s227_s16 }
   0x7   :  { %p234_p3 = por %p233_p2, %p232_p1 }
   0x9   :  { %p235_p4 = pnand %p234_p3, %p228_p0 }
   0xb   :  { %238 = shalt.err (!%p235_p4)
}
   0xc   :  { %20 = dma.hbm_to_vmem [thread:$0]  %s324_s0, 128, %s18_s13, [#allocation3]  }
   0xd   :  { %s247_s19 = scalar_lea.vmem %s27_s15, 2048  ;;  %p252_p6 = scmp.lt.s32.totalorder %s27_s15, %s27_s15 }
   0xe   :  { %p248_p5 = scmp.ne.s32.totalorder %s27_s15, %s247_s19  ;;  %p253_p7 = scmp.lt.s32.totalorder %s247_s19, %s247_s19 }
  0x10   :  { %p254_p8 = por %p253_p7, %p252_p6 }
  0x12   :  { %p255_p9 = pnand %p254_p8, %p248_p5 }
  0x14   :  { %258 = shalt.err (!%p255_p9)
}
  0x15   :  { %s287_s20 = smov 128   ;;  %s288_s21 = smov 8  }
  0x16   :  { %32 = dma.hbm_to_vmem [thread:$0]  %s325_s1, 2048, %s27_s15, [#allocation6], %s287_s20, %s287_s20, %s288_s21  }
  0x17   :  { %279 = dma.done.wait [#allocation3], 128  }
  0x18   :  { %280 = vsyncadd [#allocation3], 4294967168 }
  0x19   :  { %281 = dma.done.wait [#allocation6], 2048  }
  0x1a   :  { %282 = vsyncadd [#allocation6], 4294965248  ;;  %v289_v0 = vmov 0.0   ;;  %vm290_vm0 = vmmov 0   ;;  %v70_v1 = vld [vmem:[#allocation5 + $0x78] sm:$0xff]  ;;  %v69_v2 = vld [vmem:[#allocation5 + $0x70] sm:$0xff] }
  0x1b   :  { %177 = vmatprep.subr.mxu0 %v289_v0  ;;  %209 = vmatprep.mubr.msk.f32.mxu0 %vm290_vm0, %v289_v0  ;;  %v68_v3 = vld [vmem:[#allocation5 + $0x68] sm:$0xff]  ;;  %v67_v4 = vld [vmem:[#allocation5 + $0x60] sm:$0xff]  ;;  %v66_v5 = vld [vmem:[#allocation5 + $0x58] sm:$0xff]  ;;  %s291_s24 = smov [#allocation7]  }
  0x1c   :  { %178 = vmatpush3.xpose.msra.mxu0 %v70_v1  ;;  %v65_v6 = vld [vmem:[#allocation5 + $0x50] sm:$0xff]  ;;  %v64_v7 = vld [vmem:[#allocation5 + $0x48] sm:$0xff]  ;;  %v63_v8 = vld [vmem:[#allocation5 + $0x40] sm:$0xff]  ;;  %s149_s25 = sshll.u32 %s291_s24, 4  ;;  %s150_s25 = int_to_ptr.vmem [resolvable:$true] %s149_s25 }
  0x1d   :  { %179 = vmatprep.subr.mxu0 %v289_v0  ;;  %v62_v9 = vld [vmem:[#allocation5 + $0x38] sm:$0xff]  ;;  %v61_v10 = vld [vmem:[#allocation5 + $0x30] sm:$0xff]  ;;  %v60_v11 = vld [vmem:[#allocation5 + $0x28] sm:$0xff]  ;;  %s259_s26 = scalar_lea.vmem %s150_s25, 128  ;;  %p264_p11 = scmp.lt.s32.totalorder %s150_s25, %s150_s25 }
  0x1e   :  { %v59_v12 = vld [vmem:[#allocation5 + $0x20] sm:$0xff]  ;;  %v58_v13 = vld [vmem:[#allocation5 + $0x18] sm:$0xff]  ;;  %v57_v14 = vld [vmem:[#allocation5 + $0x10] sm:$0xff]  ;;  %p260_p10 = scmp.ne.s32.totalorder %s150_s25, %s259_s26  ;;  %p265_p12 = scmp.lt.s32.totalorder %s259_s26, %s259_s26 }
  0x1f   :  { %v56_v15 = vld [vmem:[#allocation5 + $0x8] sm:$0xff]  ;;  %v55_v16 = vld [vmem:[#allocation5] sm:$0xff]  ;;  %v54_v17 = vld [vmem:[#allocation2] sm:$0xff] }
  0x20   :  { %180 = vmatpush3.xpose.msra.mxu0 %v69_v2  ;;  %v159_v18 = vld [vmem:[%s326_s2] ss:$0 sm:$0xff]  ;;  %p266_p13 = por %p265_p12, %p264_p11 }
  0x21   :  { %181 = vmatprep.subr.mxu0 %v289_v0 }
  0x22   :  { %p267_p0 = pnand %p266_p13, %p260_p10 }
  0x24   :  { %182 = vmatpush3.xpose.msra.mxu0 %v68_v3 }
  0x25   :  { %183 = vmatprep.subr.mxu0 %v289_v0 }
  0x28   :  { %184 = vmatpush3.xpose.msra.mxu0 %v67_v4 }
  0x29   :  { %185 = vmatprep.subr.mxu0 %v289_v0 }
  0x2c   :  { %186 = vmatpush3.xpose.msra.mxu0 %v66_v5 }
  0x2d   :  { %187 = vmatprep.subr.mxu0 %v289_v0 }
  0x30   :  { %188 = vmatpush3.xpose.msra.mxu0 %v65_v6 }
  0x31   :  { %189 = vmatprep.subr.mxu0 %v289_v0 }
  0x34   :  { %190 = vmatpush3.xpose.msra.mxu0 %v64_v7 }
  0x35   :  { %191 = vmatprep.subr.mxu0 %v289_v0 }
  0x38   :  { %192 = vmatpush3.xpose.msra.mxu0 %v63_v8 }
  0x39   :  { %193 = vmatprep.subr.mxu0 %v289_v0 }
  0x3c   :  { %194 = vmatpush3.xpose.msra.mxu0 %v62_v9 }
  0x3d   :  { %195 = vmatprep.subr.mxu0 %v289_v0 }
  0x40   :  { %196 = vmatpush3.xpose.msra.mxu0 %v61_v10 }
  0x41   :  { %197 = vmatprep.subr.mxu0 %v289_v0 }
  0x44   :  { %198 = vmatpush3.xpose.msra.mxu0 %v60_v11 }
  0x45   :  { %199 = vmatprep.subr.mxu0 %v289_v0 }
  0x48   :  { %200 = vmatpush3.xpose.msra.mxu0 %v59_v12 }
  0x49   :  { %201 = vmatprep.subr.mxu0 %v289_v0 }
  0x4c   :  { %202 = vmatpush3.xpose.msra.mxu0 %v58_v13 }
  0x4d   :  { %203 = vmatprep.subr.mxu0 %v289_v0 }
  0x50   :  { %204 = vmatpush3.xpose.msra.mxu0 %v57_v14 }
  0x51   :  { %205 = vmatprep.subr.mxu0 %v289_v0 }
  0x54   :  { %206 = vmatpush3.xpose.msra.mxu0 %v56_v15 }
  0x55   :  { %207 = vmatprep.subr.mxu0 %v289_v0 }
  0x58   :  { %208 = vmatpush3.xpose.msra.mxu0 %v55_v16 }
  0x5b   :  { %210 = vmatmul.mubr.f32.vlgmr.msra.gmra.mxu0 %v54_v17 }
 0x11b   :  { %v137_v19 = vpop.f32.mrf.mxu0 }
 0x11c   :  { %v141_v20 = vadd.f32 %v159_v18, %v137_v19 }
 0x11d   :  { %v211_v21 = vpop.f32.mrf.mxu0 }
 0x11e   :  { %142 = vst [vmem:[#allocation7] sm:$0xff] %v141_v20 }
 0x11f   :  { %270 = shalt.err (!%p267_p0)
}
 0x120   :  { %152 = dma.vmem_to_hbm [thread:$0]  %s150_s25, 128, %s327_s3, [#allocation4]  }
 0x121   :  { %283 = dma.done.wait [#allocation4], 128  }
 0x122   :  { %284 = vsyncadd [#allocation4], 4294967168 }
 0x123   :  { %156 = vsyncpa [#allocation3], 1 }
 0x124   :  { %157 = vsyncpa [#allocation6], 1 }
 0x125   :  { %158 = vsyncpa [#allocation4], 1 }

</bundles_post_ra>
